<compile_context>
chip_gen: v7x
topology: tpu7x:2x2x1
jax: 0.10.0
libtpu: 0.0.40
codegen_flags: <defaults>
</compile_context>

<pallas_src>
import functools

import jax
import jax.numpy as jnp
from jax.experimental import pallas as pl
from jax.experimental.pallas import tpu as pltpu

_C1 = 0.7978845608028654          # sqrt(2/pi)
_C2 = 0.035677408136300125        # 0.044715 * sqrt(2/pi)


def _gelu_kernel(x_ref, o_ref, *, compute_dtype):
    x = x_ref[...].astype(compute_dtype)
    # 0.5*x*(1 + tanh(sqrt(2/pi)*(x + 0.044715*x^3)))
    #   == hx + hx*tanh(x*(C1 + C2*x^2)),  hx = 0.5*x   (fewer VALU ops/elem)
    inner = x * (_C1 + _C2 * (x * x))
    hx = 0.5 * x
    o_ref[...] = (hx + hx * jnp.tanh(inner)).astype(o_ref.dtype)


def _device_kind() -> str:
    try:
        return jax.devices()[0].device_kind.lower()
    except Exception:  # pragma: no cover - defensive; fall back to safe config
        return ""


def _choose_lanes(n: int) -> int:
    # Widest lane-dense last dim that divides the element count.
    for lanes in (1024, 512, 256, 128):
        if n % lanes == 0:
            return lanes
    return 128


def _generation_config(kind: str):
    """(block_bytes, vmem_limit_bytes, semantics_to_try, bf16_native)."""
    if "v7" in kind:
        # 8 MiB blocks -> 4 x 8 = 32 MiB double-buffered; raise the scoped
        # limit (32 MiB default) but stay well under 64 MiB physical.
        return (8 * 1024 * 1024, 48 * 1024 * 1024,
                (pltpu.CORE_PARALLEL, "parallel"), True)
    if "v6" in kind:
        # 4 MiB blocks -> 16 MiB double-buffered, under the 32 MiB default.
        return (4 * 1024 * 1024, None, ("parallel",), True)
    # v5e / v4 / unknown: conservative 2 MiB blocks (8 MiB double-buffered,
    # fits v5e's 16 MiB scoped default); f32 compute only (no bf16 VPU).
    return (2 * 1024 * 1024, None, ("parallel",), False)


def _run_pallas(x2d, rows, lanes, tr, grid, out_dtype, compute_dtype,
                semantics, vmem_limit_bytes):
    kernel = functools.partial(_gelu_kernel, compute_dtype=compute_dtype)
    return pl.pallas_call(
        kernel,
        out_shape=jax.ShapeDtypeStruct((rows, lanes), out_dtype),
        grid_spec=pltpu.PrefetchScalarGridSpec(
            num_scalar_prefetch=0,
            grid=grid,
            in_specs=[pl.BlockSpec((tr, lanes), lambda i: (i, 0))],
            out_specs=pl.BlockSpec((tr, lanes), lambda i: (i, 0)),
        ),
        compiler_params=pltpu.CompilerParams(
            dimension_semantics=(semantics,),
            vmem_limit_bytes=vmem_limit_bytes,
        ),
    )(x2d)


def gelu_pallas(x: jax.Array) -> jax.Array:
    orig_shape = x.shape
    orig_dtype = x.dtype
    n = x.size
    if n == 0:
        return x

    kind = _device_kind()
    block_bytes, vmem_limit_bytes, semantics_to_try, bf16_native = (
        _generation_config(kind))

    # bf16 inputs on v6e/v7x: compute natively in bf16 (halves HBM bytes AND
    # doubles per-op lane width, keeping the kernel HBM-bound).
    if bf16_native and orig_dtype == jnp.bfloat16:
        compute_dtype = jnp.bfloat16
    else:
        compute_dtype = jnp.float32

    lanes = _choose_lanes(n)
    pad = (-n) % lanes  # nonzero only when n is not a multiple of 128 (rare)

    x_flat = jnp.ravel(x)
    if pad:
        # Rare fallback: pad at most 127 elements; gelu(0) == 0 and the tail
        # is sliced off below, so semantics are unchanged.
        x_flat = jnp.pad(x_flat, (0, pad))

    rows = x_flat.size // lanes
    x2d = x_flat.reshape(rows, lanes)

    itemsize = jnp.dtype(orig_dtype).itemsize
    # Row tile: multiple of 32 (covers f32/bf16/int8 sublane packing), sized so
    # one block is ~block_bytes. Cap at full row count for small inputs (a
    # block equal to the full dim is always layout-legal).
    tr = max(32, (block_bytes // (lanes * itemsize)) // 32 * 32)
    if tr >= rows:
        tr = rows
        grid = (1,)
    else:
        # cdiv grid: ragged last block reads stale VMEM (fed to tanh, harmless)
        # and its out-of-bounds writes are dropped by Pallas.
        grid = (pl.cdiv(rows, tr),)

    out2d = None
    last_err = None
    for semantics in semantics_to_try:
        try:
            out2d = _run_pallas(x2d, rows, lanes, tr, grid, orig_dtype,
                                compute_dtype, semantics, vmem_limit_bytes)
            break
        except Exception as e:  # e.g. CORE_PARALLEL rejected -> retry safely
            last_err = e
            out2d = None
    if out2d is None:
        raise last_err

    out_flat = out2d.reshape(-1)
    if pad:
        out_flat = out_flat[:n]
    return out_flat.reshape(orig_shape)


def gelu_ref(x):
    xf = x.astype(jnp.float32)
    c = jnp.sqrt(2.0 / jnp.pi)
    y = 0.5 * xf * (1.0 + jnp.tanh(c * (xf + 0.044715 * xf ** 3)))
    return y.astype(x.dtype)


if __name__ == "__main__":
    key = jax.random.PRNGKey(0)
    x = jax.random.normal(key, (2, 4, 16, 16), dtype=jnp.float32)

    y = gelu_pallas(x)
    y = jax.block_until_ready(y)

    y_ref = gelu_ref(x)
    assert y.shape == x.shape and y.dtype == x.dtype
    assert jnp.allclose(y, y_ref, atol=1e-5, rtol=1e-5)

    print("KERNEL_OK")
</pallas_src>

<mosaic_0001>
module attributes {stable_mosaic.version = 11 : i64} {
  func.func @_gelu_kernel(%arg0: i32, %arg1: memref<2x1024xf32, #tpu.memory_space<vmem>>, %arg2: memref<2x1024xf32, #tpu.memory_space<vmem>>) attributes {dimension_semantics = [#tpu.dimension_semantics<parallel>], iteration_bounds = array<i64: 1>, scalar_prefetch = 0 : i64, scratch_operands = 0 : i64, tpu.core_type = #tpu.core_type<tc>, window_params = [{transform_indices = @transform_0, window_bounds = array<i64: 2, 1024>}, {transform_indices = @transform_1, window_bounds = array<i64: 2, 1024>}]} {
    %c0 = arith.constant 0 : index
    %c0_0 = arith.constant 0 : index
    %0 = vector.load %arg1[%c0, %c0_0] : memref<2x1024xf32, #tpu.memory_space<vmem>>, vector<2x1024xf32>
    %1 = arith.mulf %0, %0 : vector<2x1024xf32>
    %cst = arith.constant 0.0356774069 : f32
    %2 = vector.broadcast %cst : f32 to vector<2x1024xf32>
    %3 = arith.mulf %2, %1 : vector<2x1024xf32>
    %cst_1 = arith.constant 0.797884583 : f32
    %4 = vector.broadcast %cst_1 : f32 to vector<2x1024xf32>
    %5 = arith.addf %4, %3 : vector<2x1024xf32>
    %6 = arith.mulf %0, %5 : vector<2x1024xf32>
    %cst_2 = arith.constant 5.000000e-01 : f32
    %7 = vector.broadcast %cst_2 : f32 to vector<2x1024xf32>
    %8 = arith.mulf %7, %0 : vector<2x1024xf32>
    %9 = math.tanh %6 : vector<2x1024xf32>
    %10 = arith.mulf %8, %9 : vector<2x1024xf32>
    %11 = arith.addf %8, %10 : vector<2x1024xf32>
    %c0_3 = arith.constant 0 : index
    %c0_4 = arith.constant 0 : index
    %12 = vector.load %arg2[%c0_3, %c0_4] : memref<2x1024xf32, #tpu.memory_space<vmem>>, vector<2x1024xf32>
    tpu.vector_store %arg2[%c0_3, %c0_4], %11 {strides = array<i32>} : memref<2x1024xf32, #tpu.memory_space<vmem>>, vector<2x1024xf32>,
    return
  }
  func.func @transform_0(%arg0: i32) -> (i32, i32) {
    %c0_i32 = arith.constant 0 : i32
    %c0_i32_0 = arith.constant 0 : i32
    return %arg0, %c0_i32 : i32, i32
  }
  func.func @transform_1(%arg0: i32) -> (i32, i32) {
    %c0_i32 = arith.constant 0 : i32
    %c0_i32_0 = arith.constant 0 : i32
    return %arg0, %c0_i32 : i32, i32
  }
}

</mosaic_0001>

<bundles_post_ra>
// kernel: tpu_custom_call.1
= control target key start
LH: loop header
LB: loop body
LE: loop exit
PB: predicated region body
PF: predicated region fallthrough
CT: control target
= control target key end

     0   :  { %6 = vsyncpa [#allocation3], 0  ;;  %s146_s0 = inlined_call_operand.hbm [shape: f32[2,1024], index: 0, kind: input, shape index: {}]   ;;  %s147_s1 = inlined_call_operand.hbm [shape: f32[2,1024], index: 1, kind: output, shape index: {}]  }
   0x1   :  { %7 = vsyncpa [#allocation4], 0  ;;  %s110_s6 = smov [#allocation2]   ;;  %s62_s10 = scalar_lea.hbm %s146_s0, 256 }
   0x2   :  { %s14_s7 = sshll.u32 %s110_s6, 4  ;;  %p63_p0 = scmp.ne.s32.totalorder %s146_s0, %s62_s10  ;;  %s15_s7 = int_to_ptr.vmem [resolvable:$true] %s14_s7 }
   0x3   :  { %p66_p1 = scmp.lt.u32.totalorder %s62_s10, %s146_s0 }
   0x5   :  { %p68_p2 = pnand %p66_p1, %p63_p0 }
   0x7   :  { %71 = shalt.err (!%p68_p2)
}
   0x8   :  { %s72_s15 = scalar_lea.vmem %s15_s7, 256  ;;  %p77_p4 = scmp.lt.s32.totalorder %s15_s7, %s15_s7 }
   0x9   :  { %p73_p3 = scmp.ne.s32.totalorder %s15_s7, %s72_s15  ;;  %p78_p5 = scmp.lt.s32.totalorder %s72_s15, %s72_s15 }
   0xb   :  { %p79_p6 = por %p78_p5, %p77_p4 }
   0xd   :  { %p80_p7 = pnand %p79_p6, %p73_p3 }
   0xf   :  { %83 = shalt.err (!%p80_p7)
}
  0x10   :  { %17 = dma.hbm_to_vmem [thread:$0]  %s146_s0, 256, %s15_s7, [#allocation3]  }
  0x11   :  { %106 = dma.done.wait [#allocation3], 256  }
  0x12   :  { %107 = vsyncadd [#allocation3], 4294967040  ;;  %v21_v0 = vld [vmem:[#allocation2] sm:$0xff]  ;;  %v22_v1 = vld [vmem:[#allocation2 + $0x8] sm:$0xff]  ;;  %s111_s0 = smov [#allocation5]  }
  0x13   :  { %v23_v2 = vmul.f32 %v21_v0, %v21_v0  ;;  %v24_v3 = vmul.f32 %v22_v1, %v22_v1  ;;  %v31_v10 = vmul.f32 0.5, %v21_v0  ;;  %v32_v11 = vmul.f32 0.5, %v22_v1  ;;  %s47_s18 = sshll.u32 %s111_s0, 4  ;;  %s48_s18 = int_to_ptr.vmem [resolvable:$true] %s47_s18 }
  0x14   :  { %s84_s19 = scalar_lea.vmem %s48_s18, 256  ;;  %p89_p9 = scmp.lt.s32.totalorder %s48_s18, %s48_s18 }
  0x15   :  { %v25_v4 = vmul.f32 0.035677407, %v23_v2  ;;  %v26_v5 = vmul.f32 0.035677407, %v24_v3  ;;  %p85_p8 = scmp.ne.s32.totalorder %s48_s18, %s84_s19  ;;  %p90_p10 = scmp.lt.s32.totalorder %s84_s19, %s84_s19 }
  0x17   :  { %v27_v6 = vadd.f32 0.7978846, %v25_v4  ;;  %v28_v7 = vadd.f32 0.7978846, %v26_v5  ;;  %p91_p11 = por %p90_p10, %p89_p9 }
  0x19   :  { %v29_v8 = vmul.f32 %v27_v6, %v21_v0  ;;  %v30_v9 = vmul.f32 %v28_v7, %v22_v1  ;;  %p92_p12 = pnand %p91_p11, %p85_p8 }
  0x1b   :  { %58 = vtanh.f32 %v29_v8 }
  0x1c   :  { %60 = vtanh.f32 %v30_v9 }
  0x25   :  { %v59_v12 = vpop.eup %58 }
  0x26   :  { %v61_v13 = vpop.eup %60  ;;  %v35_v14 = vmul.f32 %v59_v12, %v31_v10 }
  0x27   :  { %v36_v15 = vmul.f32 %v61_v13, %v32_v11 }
  0x28   :  { %v37_v16 = vadd.f32 %v35_v14, %v31_v10 }
  0x29   :  { %v38_v17 = vadd.f32 %v36_v15, %v32_v11 }
  0x2a   :  { %39 = vst [vmem:[#allocation5] sm:$0xff] %v37_v16 }
  0x2b   :  { %40 = vst [vmem:[#allocation5 + $0x8] sm:$0xff] %v38_v17 }
  0x2c   :  { %95 = shalt.err (!%p92_p12)
}
  0x2d   :  { %s96_s22 = scalar_lea.hbm %s147_s1, 256 }
  0x2e   :  { %p97_p13 = scmp.ne.s32.totalorder %s147_s1, %s96_s22  ;;  %p100_p0 = scmp.lt.u32.totalorder %s96_s22, %s147_s1 }
  0x30   :  { %p102_p1 = pnand %p100_p0, %p97_p13 }
  0x32   :  { %105 = shalt.err (!%p102_p1)
}
  0x33   :  { %50 = dma.vmem_to_hbm [thread:$0]  %s48_s18, 256, %s147_s1, [#allocation4]  }
  0x34   :  { %108 = dma.done.wait [#allocation4], 256  }
  0x35   :  { %109 = vsyncadd [#allocation4], 4294967040 }
  0x36   :  { %54 = vsyncpa [#allocation3], 1 }
  0x37   :  { %55 = vsyncpa [#allocation4], 1 }

</bundles_post_ra>
